<compile_context>
chip_gen: v7x
topology: tpu7x:2x2x1
jax: 0.10.0
libtpu: 0.0.40
codegen_flags: <defaults>
</compile_context>

<pallas_src>
import functools

import jax
import jax.numpy as jnp
import numpy as np
from jax.experimental import pallas as pl
from jax.experimental.pallas import tpu as pltpu


# ----------------------------- Pallas kernel ---------------------------------
def _gat_block_kernel(x_ref, w_ref, asrc_bd_ref, adst_bd_ref, maskb_ref, bias_ref,
                      bd_ref, sd_ref, dsel_ref, srep_ref, msel_ref, csum_ref,
                      o_ref, *, n, h, c):
    """GATConv(heads=h, concat=False) + residual + relu, fully in-VMEM.

    x_ref       : [N, C]        node features
    w_ref       : [C, H*C]      shared lin weight (x @ W)
    asrc_bd_ref : [H*C, H]      block-diagonal source attention vectors
    adst_bd_ref : [H*C, H]      block-diagonal target attention vectors
    maskb_ref   : [N, N]        additive mask: 0 where edge j->i, -1e30 otherwise
    bias_ref    : [1, C]        output bias (concat=False => shape [C])
    bd_ref      : [H, H*N]      Bd[g, g*N+j] = 1      (head-block broadcast)
    sd_ref      : [H*N, H]      Sd[g*N+j, g] = 1      (segmented head sums)
    dsel_ref    : [N, H*N]      Dsel[j, g*N+j] = 1    (per-head diag select)
    srep_ref    : [H*N, N]      Srep[g*N+j, j] = 1    (row replication)
    msel_ref    : [H*N, H*C]    Msel[g*N+j, g*C+c] = 1 (head-block mask)
    csum_ref    : [H*C, C]      Csum[g*C+c, c] = 1    (fold head blocks to C)
    o_ref       : [N, C]        relu(x + gat(x))
    """
    f32 = jnp.float32
    x = x_ref[...]                                                      # [N, C]

    # (1) shared linear transform for all heads at once (MXU).
    xw = jnp.dot(x, w_ref[...], preferred_element_type=f32)            # [N, H*C]

    # (2) attention-logit halves for all heads via block-diagonal matmuls (MXU)
    #     -- replaces 24 per-head XLU lane reductions.
    a_dst = jnp.dot(xw, adst_bd_ref[...], preferred_element_type=f32)  # [N, H]
    a_src = jnp.dot(xw, asrc_bd_ref[...], preferred_element_type=f32)  # [N, H]

    # (3) broadcast both halves and the mask onto the lane-dense [N, H*N] slab.
    bd = bd_ref[...]                                                    # [H, H*N]
    dsel = dsel_ref[...]                                                # [N, H*N]
    dpart = jnp.dot(a_dst, bd, preferred_element_type=f32)              # a_dst[i,h] at col h*N+j
    s_pre = jnp.dot(a_src, bd, preferred_element_type=f32)              # a_src[i,h] at col h*N+j
    ones_nn = jnp.ones((n, n), f32)
    spart = jnp.dot(ones_nn, s_pre * dsel,
                    preferred_element_type=f32)                         # a_src[j,h] at col h*N+j
    maskb = jnp.dot(maskb_ref[...], dsel,
                    preferred_element_type=f32)                         # mask[i,j] at col h*N+j

    # (4) per-(row, head) finite shift = upper bound of the per-row max.
    #     Softmax is shift-invariant, so the result is unchanged; the bound
    #     keeps every exponent <= 0 (no overflow) and stays finite even though
    #     we never take a data-dependent segmented max on the [N, H*N] slab.
    smax = jnp.max(a_src, axis=0, keepdims=True)                        # [1, H]
    mraw = a_dst + smax
    m = jnp.where(mraw > 0, mraw, 0.2 * mraw)                           # [N, H]
    m_bcast = jnp.dot(m, bd, preferred_element_type=f32)                # [N, H*N]

    # (5) leaky-relu logits, additive mask, exp (VPU + EUP, lane-dense slab).
    raw = dpart + spart
    e = jnp.where(raw > 0, raw, 0.2 * raw)
    p = jnp.exp(e - m_bcast + maskb)            # masked entries: exp(-1e30) == 0

    # (6) per-head softmax denominators via a segmented-sum matmul (MXU),
    #     then normalize with multiply-by-reciprocal (exact; approx=True would
    #     exceed the 1e-5 tolerance of the reference check).
    row_sums = jnp.dot(p, sd_ref[...], preferred_element_type=f32)      # [N, H]
    inv = pl.reciprocal(row_sums, approx=False)                         # [N, H]
    attn = p * jnp.dot(inv, bd, preferred_element_type=f32)             # [N, H*N]

    # (7) rearrange xw -> xh_all[h*N+j, c] = xw[j, h*C+c] using matmuls only.
    xrep = jnp.dot(srep_ref[...], xw, preferred_element_type=f32)       # [H*N, H*C]
    xh_all = jnp.dot(xrep * msel_ref[...], csum_ref[...],
                     preferred_element_type=f32)                        # [H*N, C]

    # (8) single fused aggregation over ALL heads, head mean, bias, residual relu.
    acc = jnp.dot(attn, xh_all, preferred_element_type=f32)             # [N, C]
    y = acc * (1.0 / h) + bias_ref[...]
    o_ref[...] = jnp.maximum(x + y, 0.0)


# ------------------------------- wrapper --------------------------------------
def multi_attention_block(x, adj, w, att_src, att_dst, bias):
    n, c = x.shape
    h = att_src.shape[0]
    f32 = jnp.float32

    # Additive attention mask: 0 where edge j -> i exists, -1e30 otherwise.
    mask_bias = jnp.where(adj > 0.0, 0.0, -1e30).astype(f32)            # [N, N]

    # Block-diagonal attention vectors so alpha_{src,dst} = xw @ A_bd (MXU).
    eye_h = jnp.eye(h, dtype=f32)
    asrc_bd = (eye_h[:, None, :] * att_src[:, :, None]).reshape(h * c, h)
    adst_bd = (eye_h[:, None, :] * att_dst[:, :, None]).reshape(h * c, h)

    # Structural (data-independent) 0/1 selection matrices, built on host.
    bd = jnp.asarray(np.kron(np.eye(h), np.ones((1, n))), f32)          # [H, H*N]
    sd = jnp.asarray(np.kron(np.eye(h), np.ones((n, 1))), f32)          # [H*N, H]
    dsel = jnp.asarray(np.tile(np.eye(n), (1, h)), f32)                 # [N, H*N]
    srep = jnp.asarray(np.tile(np.eye(n), (h, 1)), f32)                 # [H*N, N]
    msel = jnp.asarray(np.kron(np.eye(h), np.ones((n, c))), f32)        # [H*N, H*C]
    csum = jnp.asarray(np.tile(np.eye(c), (h, 1)), f32)                 # [H*C, C]

    kernel = functools.partial(_gat_block_kernel, n=n, h=h, c=c)
    vmem = pl.BlockSpec(memory_space=pltpu.MemorySpace.VMEM)
    return pl.pallas_call(
        kernel,
        out_shape=jax.ShapeDtypeStruct((n, c), f32),
        in_specs=[vmem] * 12,
        out_specs=vmem,
    )(x, w, asrc_bd, adst_bd, mask_bias, bias, bd, sd, dsel, srep, msel, csum)


# --------------------------- pure-JAX reference -------------------------------
def _reference(x, adj, w, att_src, att_dst, bias):
    n, c = x.shape
    h = att_src.shape[0]
    xw = (x @ w).reshape(n, h, c)                                       # [N, H, C]
    a_src = jnp.sum(xw * att_src[None], axis=-1)                        # [N, H]
    a_dst = jnp.sum(xw * att_dst[None], axis=-1)                        # [N, H]
    e = a_dst.T[:, :, None] + a_src.T[:, None, :]                       # [H, Ni, Nj]
    e = jnp.where(e > 0, e, 0.2 * e)
    mask = (adj > 0.0)[None]
    e = jnp.where(mask, e, -1e30)
    p = jnp.where(mask, jnp.exp(e - jnp.max(e, axis=-1, keepdims=True)), 0.0)
    attn = p / jnp.sum(p, axis=-1, keepdims=True)
    out_h = jnp.einsum("hij,jhc->hic", attn, xw)                        # [H, N, C]
    y = jnp.mean(out_h, axis=0) + bias[0]
    return jnp.maximum(x + y, 0.0)


# ----------------------------------- main -------------------------------------
if __name__ == "__main__":
    N, C, H = 16, 8, 12      # nodes, channels, heads  (GATConv(channels, channels, heads=12))
    E = 32                   # number of random edges

    key = jax.random.PRNGKey(0)
    kx, ke, kw, ks, kd = jax.random.split(key, 5)

    # node features [N, C]
    x = jax.random.normal(kx, (N, C), dtype=jnp.float32)

    # edge_index [2, E]: row 0 = source nodes, row 1 = target nodes
    edge_index = jax.random.randint(ke, (2, E), 0, N, dtype=jnp.int32)

    # densify to adjacency mask adj[dst, src]; add self-loops (PyG default).
    # Self-loops also guarantee every softmax row has >= 1 unmasked entry.
    src, dst = edge_index[0], edge_index[1]
    adj = jnp.zeros((N, N), jnp.float32).at[dst, src].set(1.0)
    adj = adj.at[jnp.arange(N), jnp.arange(N)].set(1.0)

    # deterministic GATConv parameters (glorot-ish scaling), bias = 0 as in PyG init
    scale_w = (2.0 / (C + H * C)) ** 0.5
    w = scale_w * jax.random.normal(kw, (C, H * C), dtype=jnp.float32)      # lin weight
    scale_a = (2.0 / (1 + C)) ** 0.5
    att_src = scale_a * jax.random.normal(ks, (H, C), dtype=jnp.float32)    # att_src [H, C]
    att_dst = scale_a * jax.random.normal(kd, (H, C), dtype=jnp.float32)    # att_dst [H, C]
    bias = jnp.zeros((1, C), jnp.float32)

    out = multi_attention_block(x, adj, w, att_src, att_dst, bias)
    out = jax.block_until_ready(out)

    ref = _reference(x, adj, w, att_src, att_dst, bias)
    np.testing.assert_allclose(np.asarray(out), np.asarray(ref), rtol=1e-5, atol=1e-5)

    print("KERNEL_OK")
</pallas_src>

<mosaic_0001>
module attributes {stable_mosaic.version = 11 : i64} {
  func.func @_gat_block_kernel(%arg0: memref<16x8xf32, #tpu.memory_space<vmem>>, %arg1: memref<8x96xf32, #tpu.memory_space<vmem>>, %arg2: memref<96x12xf32, #tpu.memory_space<vmem>>, %arg3: memref<96x12xf32, #tpu.memory_space<vmem>>, %arg4: memref<16x16xf32, #tpu.memory_space<vmem>>, %arg5: memref<1x8xf32, #tpu.memory_space<vmem>>, %arg6: memref<12x192xf32, #tpu.memory_space<vmem>>, %arg7: memref<192x12xf32, #tpu.memory_space<vmem>>, %arg8: memref<16x192xf32, #tpu.memory_space<vmem>>, %arg9: memref<192x16xf32, #tpu.memory_space<vmem>>, %arg10: memref<192x96xf32, #tpu.memory_space<vmem>>, %arg11: memref<96x8xf32, #tpu.memory_space<vmem>>, %arg12: memref<16x8xf32, #tpu.memory_space<vmem>>) attributes {dimension_semantics = [], scalar_prefetch = 0 : i64, scratch_operands = 0 : i64, tpu.core_type = #tpu.core_type<tc>} {
    %c0 = arith.constant 0 : index
    %c0_0 = arith.constant 0 : index
    %0 = vector.load %arg0[%c0, %c0_0] : memref<16x8xf32, #tpu.memory_space<vmem>>, vector<16x8xf32>
    %c0_1 = arith.constant 0 : index
    %c0_2 = arith.constant 0 : index
    %1 = vector.load %arg1[%c0_1, %c0_2] : memref<8x96xf32, #tpu.memory_space<vmem>>, vector<8x96xf32>
    %cst = arith.constant dense<0.000000e+00> : vector<16x96xf32>
    %2 = tpu.matmul %0, %1, %cst {dimension_numbers = #tpu.dot_dimension_numbers<[1], [0], [0], [1], [0, 0, 1, 1], [], []>} : vector<16x8xf32>, vector<8x96xf32>, vector<16x96xf32> -> vector<16x96xf32>
    %c0_3 = arith.constant 0 : index
    %c0_4 = arith.constant 0 : index
    %3 = vector.load %arg3[%c0_3, %c0_4] : memref<96x12xf32, #tpu.memory_space<vmem>>, vector<96x12xf32>
    %cst_5 = arith.constant dense<0.000000e+00> : vector<16x12xf32>
    %4 = tpu.matmul %2, %3, %cst_5 {dimension_numbers = #tpu.dot_dimension_numbers<[1], [0], [0], [1], [0, 0, 1, 1], [], []>} : vector<16x96xf32>, vector<96x12xf32>, vector<16x12xf32> -> vector<16x12xf32>
    %c0_6 = arith.constant 0 : index
    %c0_7 = arith.constant 0 : index
    %5 = vector.load %arg2[%c0_6, %c0_7] : memref<96x12xf32, #tpu.memory_space<vmem>>, vector<96x12xf32>
    %cst_8 = arith.constant dense<0.000000e+00> : vector<16x12xf32>
    %6 = tpu.matmul %2, %5, %cst_8 {dimension_numbers = #tpu.dot_dimension_numbers<[1], [0], [0], [1], [0, 0, 1, 1], [], []>} : vector<16x96xf32>, vector<96x12xf32>, vector<16x12xf32> -> vector<16x12xf32>
    %c0_9 = arith.constant 0 : index
    %c0_10 = arith.constant 0 : index
    %7 = vector.load %arg6[%c0_9, %c0_10] : memref<12x192xf32, #tpu.memory_space<vmem>>, vector<12x192xf32>
    %c0_11 = arith.constant 0 : index
    %c0_12 = arith.constant 0 : index
    %8 = vector.load %arg8[%c0_11, %c0_12] : memref<16x192xf32, #tpu.memory_space<vmem>>, vector<16x192xf32>
    %cst_13 = arith.constant dense<0.000000e+00> : vector<16x192xf32>
    %9 = tpu.matmul %4, %7, %cst_13 {dimension_numbers = #tpu.dot_dimension_numbers<[1], [0], [0], [1], [0, 0, 1, 1], [], []>} : vector<16x12xf32>, vector<12x192xf32>, vector<16x192xf32> -> vector<16x192xf32>
    %cst_14 = arith.constant dense<0.000000e+00> : vector<16x192xf32>
    %10 = tpu.matmul %6, %7, %cst_14 {dimension_numbers = #tpu.dot_dimension_numbers<[1], [0], [0], [1], [0, 0, 1, 1], [], []>} : vector<16x12xf32>, vector<12x192xf32>, vector<16x192xf32> -> vector<16x192xf32>
    %cst_15 = arith.constant 1.000000e+00 : f32
    %11 = vector.broadcast %cst_15 : f32 to vector<16x16xf32>
    %12 = arith.mulf %10, %8 : vector<16x192xf32>
    %cst_16 = arith.constant dense<0.000000e+00> : vector<16x192xf32>
    %13 = tpu.matmul %11, %12, %cst_16 {dimension_numbers = #tpu.dot_dimension_numbers<[1], [0], [0], [1], [0, 0, 1, 1], [], []>} : vector<16x16xf32>, vector<16x192xf32>, vector<16x192xf32> -> vector<16x192xf32>
    %c0_17 = arith.constant 0 : index
    %c0_18 = arith.constant 0 : index
    %14 = vector.load %arg4[%c0_17, %c0_18] : memref<16x16xf32, #tpu.memory_space<vmem>>, vector<16x16xf32>
    %cst_19 = arith.constant dense<0.000000e+00> : vector<16x192xf32>
    %15 = tpu.matmul %14, %8, %cst_19 {dimension_numbers = #tpu.dot_dimension_numbers<[1], [0], [0], [1], [0, 0, 1, 1], [], []>} : vector<16x16xf32>, vector<16x192xf32>, vector<16x192xf32> -> vector<16x192xf32>
    %cst_20 = arith.constant dense<0xFF800000> : vector<12xf32>
    %16 = vector.multi_reduction <maximumf>, %6, %cst_20 [0] : vector<16x12xf32> to vector<12xf32>
    %17 = vector.shape_cast %16 : vector<12xf32> to vector<1x12xf32>
    %18 = vector.broadcast %17 : vector<1x12xf32> to vector<16x12xf32>
    %19 = arith.addf %4, %18 : vector<16x12xf32>
    %cst_21 = arith.constant 0.000000e+00 : f32
    %20 = vector.broadcast %cst_21 : f32 to vector<16x12xf32>
    %21 = arith.cmpf ogt, %19, %20 : vector<16x12xf32>
    %cst_22 = arith.constant 2.000000e-01 : f32
    %22 = vector.broadcast %cst_22 : f32 to vector<16x12xf32>
    %23 = arith.mulf %22, %19 : vector<16x12xf32>
    %24 = arith.select %21, %19, %23 : vector<16x12xi1>, vector<16x12xf32>
    %cst_23 = arith.constant dense<0.000000e+00> : vector<16x192xf32>
    %25 = tpu.matmul %24, %7, %cst_23 {dimension_numbers = #tpu.dot_dimension_numbers<[1], [0], [0], [1], [0, 0, 1, 1], [], []>} : vector<16x12xf32>, vector<12x192xf32>, vector<16x192xf32> -> vector<16x192xf32>
    %26 = arith.addf %9, %13 : vector<16x192xf32>
    %cst_24 = arith.constant 0.000000e+00 : f32
    %27 = vector.broadcast %cst_24 : f32 to vector<16x192xf32>
    %28 = arith.cmpf ogt, %26, %27 : vector<16x192xf32>
    %cst_25 = arith.constant 2.000000e-01 : f32
    %29 = vector.broadcast %cst_25 : f32 to vector<16x192xf32>
    %30 = arith.mulf %29, %26 : vector<16x192xf32>
    %31 = arith.select %28, %26, %30 : vector<16x192xi1>, vector<16x192xf32>
    %32 = arith.subf %31, %25 : vector<16x192xf32>
    %33 = arith.addf %32, %15 : vector<16x192xf32>
    %34 = math.exp %33 : vector<16x192xf32>
    %c0_26 = arith.constant 0 : index
    %c0_27 = arith.constant 0 : index
    %35 = vector.load %arg7[%c0_26, %c0_27] : memref<192x12xf32, #tpu.memory_space<vmem>>, vector<192x12xf32>
    %cst_28 = arith.constant dense<0.000000e+00> : vector<16x12xf32>
    %36 = tpu.matmul %34, %35, %cst_28 {dimension_numbers = #tpu.dot_dimension_numbers<[1], [0], [0], [1], [0, 0, 1, 1], [], []>} : vector<16x192xf32>, vector<192x12xf32>, vector<16x12xf32> -> vector<16x12xf32>
    %37 = tpu.reciprocal %36 : vector<16x12xf32> -> vector<16x12xf32>
    %cst_29 = arith.constant dense<0.000000e+00> : vector<16x192xf32>
    %38 = tpu.matmul %37, %7, %cst_29 {dimension_numbers = #tpu.dot_dimension_numbers<[1], [0], [0], [1], [0, 0, 1, 1], [], []>} : vector<16x12xf32>, vector<12x192xf32>, vector<16x192xf32> -> vector<16x192xf32>
    %39 = arith.mulf %34, %38 : vector<16x192xf32>
    %c0_30 = arith.constant 0 : index
    %c0_31 = arith.constant 0 : index
    %40 = vector.load %arg9[%c0_30, %c0_31] : memref<192x16xf32, #tpu.memory_space<vmem>>, vector<192x16xf32>
    %cst_32 = arith.constant dense<0.000000e+00> : vector<192x96xf32>
    %41 = tpu.matmul %40, %2, %cst_32 {dimension_numbers = #tpu.dot_dimension_numbers<[1], [0], [0], [1], [0, 0, 1, 1], [], []>} : vector<192x16xf32>, vector<16x96xf32>, vector<192x96xf32> -> vector<192x96xf32>
    %c0_33 = arith.constant 0 : index
    %c0_34 = arith.constant 0 : index
    %42 = vector.load %arg10[%c0_33, %c0_34] : memref<192x96xf32, #tpu.memory_space<vmem>>, vector<192x96xf32>
    %43 = arith.mulf %41, %42 : vector<192x96xf32>
    %c0_35 = arith.constant 0 : index
    %c0_36 = arith.constant 0 : index
    %44 = vector.load %arg11[%c0_35, %c0_36] : memref<96x8xf32, #tpu.memory_space<vmem>>, vector<96x8xf32>
    %cst_37 = arith.constant dense<0.000000e+00> : vector<192x8xf32>
    %45 = tpu.matmul %43, %44, %cst_37 {dimension_numbers = #tpu.dot_dimension_numbers<[1], [0], [0], [1], [0, 0, 1, 1], [], []>} : vector<192x96xf32>, vector<96x8xf32>, vector<192x8xf32> -> vector<192x8xf32>
    %cst_38 = arith.constant dense<0.000000e+00> : vector<16x8xf32>
    %46 = tpu.matmul %39, %45, %cst_38 {dimension_numbers = #tpu.dot_dimension_numbers<[1], [0], [0], [1], [0, 0, 1, 1], [], []>} : vector<16x192xf32>, vector<192x8xf32>, vector<16x8xf32> -> vector<16x8xf32>
    %cst_39 = arith.constant 0.0833333358 : f32
    %47 = vector.broadcast %cst_39 : f32 to vector<16x8xf32>
    %48 = arith.mulf %46, %47 : vector<16x8xf32>
    %c0_40 = arith.constant 0 : index
    %c0_41 = arith.constant 0 : index
    %49 = vector.load %arg5[%c0_40, %c0_41] : memref<1x8xf32, #tpu.memory_space<vmem>>, vector<1x8xf32>
    %50 = vector.broadcast %49 : vector<1x8xf32> to vector<16x8xf32>
    %51 = arith.addf %48, %50 : vector<16x8xf32>
    %52 = arith.addf %0, %51 : vector<16x8xf32>
    %cst_42 = arith.constant 0.000000e+00 : f32
    %53 = vector.broadcast %cst_42 : f32 to vector<16x8xf32>
    %54 = arith.maximumf %52, %53 : vector<16x8xf32>
    %c0_43 = arith.constant 0 : index
    %c0_44 = arith.constant 0 : index
    %55 = vector.load %arg12[%c0_43, %c0_44] : memref<16x8xf32, #tpu.memory_space<vmem>>, vector<16x8xf32>
    tpu.vector_store %arg12[%c0_43, %c0_44], %54 {strides = array<i32>} : memref<16x8xf32, #tpu.memory_space<vmem>>, vector<16x8xf32>,
    return
  }
}

</mosaic_0001>

<bundles_post_ra>
// kernel: tpu_custom_call.1
= control target key start
LH: loop header
LB: loop body
LE: loop exit
PB: predicated region body
PF: predicated region fallthrough
CT: control target
= control target key end

     0   :  { %vm44_vm0 = vcmask 64512   ;;  %vm138_vm1 = vcmask 785408   ;;  %vm322_vm2 = vcmask 1043456   ;;  %vm2217_vm3 = vmmov 1   ;;  %s2843_s1 = inlined_call_operand.vmem [shape: f32[8,96], index: 1, kind: input, shape index: {}]   ;;  %s2844_s0 = inlined_call_operand.vmem [shape: f32[16,8], index: 0, kind: input, shape index: {}]   ;;  %s2845_s3 = inlined_call_operand.vmem [shape: f32[96,12], index: 3, kind: input, shape index: {}]   ;;  %s2846_s2 = inlined_call_operand.vmem [shape: f32[96,12], index: 2, kind: input, shape index: {}]   ;;  %s2847_s6 = inlined_call_operand.vmem [shape: f32[12,192], index: 6, kind: input, shape index: {}]   ;;  %s2848_s8 = inlined_call_operand.vmem [shape: f32[16,192], index: 8, kind: input, shape index: {}]   ;;  %s2849_s7 = inlined_call_operand.vmem [shape: f32[192,12], index: 7, kind: input, shape index: {}]   ;;  %s2850_s4 = inlined_call_operand.vmem [shape: f32[16,16], index: 4, kind: input, shape index: {}]   ;;  %s2851_s11 = inlined_call_operand.vmem [shape: f32[96,8], index: 11, kind: input, shape index: {}]   ;;  %s2852_s9 = inlined_call_operand.vmem [shape: f32[192,16], index: 9, kind: input, shape index: {}]   ;;  %s2853_s10 = inlined_call_operand.vmem [shape: f32[192,96], index: 10, kind: input, shape index: {}]   ;;  %s2854_s5 = inlined_call_operand.vmem [shape: f32[1,8], index: 5, kind: input, shape index: {}]   ;;  %s2855_s12 = inlined_call_operand.vmem [shape: f32[16,8], index: 12, kind: output, shape index: {}]  }
   0x1   :  { %v43_v0 = vld [vmem:[%s2843_s1] sm:$0xff]  ;;  %v42_v2 = vld [vmem:[%s2844_s0 + $0x8] sm:$0xff]  ;;  %v128_v5 = vld [vmem:[%s2845_s3 + $0x10] sm:$0xff]  ;;  %v2218_v49 = vmov 0.0   ;;  %vm315_vm5 = vcmask 97280   ;;  %vm410_vm6 = vcmask 130048  }
   0x2   :  { %v41_v1 = vld [vmem:[%s2844_s0] sm:$0xff]  ;;  %1854 = vmatprep.subr.mxu0 %v43_v0  ;;  %v127_v4 = vld [vmem:[%s2845_s3 + $0x8] sm:$0xff]  ;;  %v129_v7 = vld [vmem:[%s2845_s3 + $0x18] sm:$0xff]  ;;  %393 = vmatprep.mubr.f32.mxu1 %v2218_v49  ;;  %vm811_vm13 = vcmask 523264  }
   0x3   :  { %1856 = vmatprep.mubr.msk.f32.mxu0 %vm44_vm0, %v41_v1  ;;  %v126_v3 = vld [vmem:[%s2845_s3] sm:$0xff]  ;;  %1855 = vmatpush3.msra.mxu0 %v43_v0  ;;  %v2017_v8 = vpack.c.bf16 %v129_v7, %v128_v5  ;;  %v131_v10 = vld [vmem:[%s2845_s3 + $0x28] sm:$0xff]  ;;  %v132_v12 = vld [vmem:[%s2845_s3 + $0x30] sm:$0xff] }
   0x4   :  { %v2013_v6 = vpack.c.bf16 %v127_v4, %v126_v3  ;;  %1857 = vmatmul.mubr.msk.f32.vlgmr.msra.gmra.mrb[0].mxu0 %vm44_vm0, %v42_v2  ;;  %v130_v9 = vld [vmem:[%s2845_s3 + $0x20] sm:$0xff]  ;;  %v133_v13 = vld [vmem:[%s2845_s3 + $0x38] sm:$0xff]  ;;  %v135_v16 = vld [vmem:[%s2845_s3 + $0x48] sm:$0xff] }
   0x5   :  { %v2021_v11 = vpack.c.bf16 %v131_v10, %v130_v9  ;;  %v2025_v14 = vpack.c.bf16 %v133_v13, %v132_v12  ;;  %v134_v15 = vld [vmem:[%s2845_s3 + $0x40] sm:$0xff]  ;;  %v136_v18 = vld [vmem:[%s2845_s3 + $0x50] sm:$0xff]  ;;  %v137_v19 = vld [vmem:[%s2845_s3 + $0x58] sm:$0xff] }
   0x6   :  { %2014 = vmatprep.subr.bf16.mxu0 %v2013_v6  ;;  %v2029_v17 = vpack.c.bf16 %v135_v16, %v134_v15  ;;  %v2033_v20 = vpack.c.bf16 %v137_v19, %v136_v18  ;;  %v220_v21 = vld [vmem:[%s2846_s2] sm:$0xff]  ;;  %v221_v22 = vld [vmem:[%s2846_s2 + $0x8] sm:$0xff]  ;;  %v222_v24 = vld [vmem:[%s2846_s2 + $0x10] sm:$0xff]  ;;  %v2219_v18 = vmov 1.0  }
   0x7   :  { %2016 = vmatpush3.bf16.msra.mxu0 %v2013_v6  ;;  %v2037_v23 = vpack.c.bf16 %v221_v22, %v220_v21  ;;  %v223_v25 = vld [vmem:[%s2846_s2 + $0x18] sm:$0xff]  ;;  %v224_v30 = vld [vmem:[%s2846_s2 + $0x20] sm:$0xff]  ;;  %v225_v31 = vld [vmem:[%s2846_s2 + $0x28] sm:$0xff] }
   0x8   :  { %2018 = vmatprep.subr.bf16.mxu0 %v2017_v8  ;;  %v2041_v28 = vpack.c.bf16 %v223_v25, %v222_v24  ;;  %v2045_v32 = vpack.c.bf16 %v225_v31, %v224_v30  ;;  %v226_v33 = vld [vmem:[%s2846_s2 + $0x30] sm:$0xff]  ;;  %v227_v34 = vld [vmem:[%s2846_s2 + $0x38] sm:$0xff]  ;;  %v228_v36 = vld [vmem:[%s2846_s2 + $0x40] sm:$0xff]  ;;  %v2220_v24 = vmov 0.0|0.0  }
   0x9   :  { %v2049_v35 = vpack.c.bf16 %v227_v34, %v226_v33  ;;  %v229_v37 = vld [vmem:[%s2846_s2 + $0x48] sm:$0xff]  ;;  %v230_v39 = vld [vmem:[%s2846_s2 + $0x50] sm:$0xff]  ;;  %v231_v40 = vld [vmem:[%s2846_s2 + $0x58] sm:$0xff] }
   0xa   :  { %v2053_v38 = vpack.c.bf16 %v229_v37, %v228_v36  ;;  %v2057_v41 = vpack.c.bf16 %v231_v40, %v230_v39  ;;  %v308_v42 = vld [vmem:[%s2847_s6 + $0x8] sm:$0xff]  ;;  %v310_v43 = vld [vmem:[%s2847_s6 + $0x18] sm:$0xf]  ;;  %vm2381_vm4 = vmpackc.low %vm322_vm2, %vm2217_vm3 }
   0xb   :  { %2020 = vmatpush3.bf16.msra.mxu0 %v2017_v8  ;;  %v2385_v45 = vpack.c.bf16 %v310_v43, %v308_v42  ;;  %v307_v46 = vld [vmem:[%s2847_s6] sm:$0xff]  ;;  %v309_v47 = vld [vmem:[%s2847_s6 + $0x10] sm:$0xf]  ;;  %v312_v5 = vld [vmem:[%s2848_s8 + $0x8] sm:$0xff] }
   0xc   :  { %2022 = vmatprep.subr.bf16.mxu0 %v2021_v11  ;;  %v2393_v48 = vpack.c.bf16 %v309_v47, %v307_v46  ;;  %v311_v3 = vld [vmem:[%s2848_s8] sm:$0xff]  ;;  %v313_v4 = vld [vmem:[%s2848_s8 + $0x10] sm:$0xff]  ;;  %v314_v6 = vld [vmem:[%s2848_s8 + $0x18] sm:$0xff] }
   0xd   :  { %2063 = vmatprep.subr.msk.bf16.mxu1 %vm2381_vm4, %v2385_v45  ;;  %v2071_v15 = vpack.c.bf16 %v314_v6, %v312_v5  ;;  %v2073_v16 = vpack.c.bf16 %v313_v4, %v311_v3  ;;  %v787_v19 = vld [vmem:[%s2849_s7] sm:$0xff]  ;;  %v492_v30 = vld [vmem:[%s2850_s4 + $0x8] sm:$0xff]  ;;  %v794_v36 = vld [vmem:[%s2849_s7 + $0x38] sm:$0xff] }
   0xe   :  { %2066 = vmatpush1.bf16.msk.msra.mxu1 %vm2381_vm4, %v2393_v48  ;;  %v792_v33 = vld [vmem:[%s2849_s7 + $0x28] sm:$0xff]  ;;  %v798_v42 = vld [vmem:[%s2849_s7 + $0x58] sm:$0xff]  ;;  %v799_v44 = vld [vmem:[%s2849_s7 + $0x60] sm:$0xff] }
   0xf   :  { %2024 = vmatpush3.bf16.msra.mxu0 %v2021_v11  ;;  %v796_v39 = vld [vmem:[%s2849_s7 + $0x48] sm:$0xff]  ;;  %v801_v47 = vld [vmem:[%s2849_s7 + $0x70] sm:$0xff] }
  0x10   :  { %2026 = vmatprep.subr.bf16.mxu0 %v2025_v14 }
  0x13   :  { %2028 = vmatpush3.bf16.msra.mxu0 %v2025_v14 }
  0x14   :  { %2030 = vmatprep.subr.bf16.mxu0 %v2029_v17 }
  0x17   :  { %2032 = vmatpush3.bf16.msra.mxu0 %v2029_v17 }
  0x18   :  { %2034 = vmatprep.subr.bf16.mxu0 %v2033_v20 }
  0x1b   :  { %2036 = vmatpush3.bf16.msra.mxu0 %v2033_v20  ;;  %v788_v20 = vld [vmem:[%s2849_s7 + $0x8] sm:$0xff] }
  0x1c   :  { %2038 = vmatprep.subr.bf16.mxu0 %v2037_v23  ;;  %v2088_v25 = vpack.c.bf16 %v788_v20, %v787_v19 }
  0xd7   :  { %v1858_v26 = vpop.f32.mrb[0].mxu0 }
  0xd8   :  { %v117_v27 = vpop.f32.mrb[1].mxu0 }
  0xd9   :  { %v2345_v29 = vpack.c.bf16 %v1858_v26, %v117_v27  ;;  %1883 = vmatprep.mubr.msk.f32.mxu0 %vm138_vm1, %v117_v27 }
  0xda   :  { %1884 = vmatmul.mubr.msk.f32.vlgmr.msra.gmra.mrb[2].mxu0 %vm138_vm1, %v1858_v26 }
  0xdb   :  { %2040 = vmatpush3.bf16.msra.mxu0 %v2037_v23  ;;  %1910 = vmatprep.mubr.msk.f32.mxu0 %vm138_vm1, %v117_v27  ;;  %v491_v23 = vld [vmem:[%s2850_s4] sm:$0xff]  ;;  %v790_v27 = vld [vmem:[%s2849_s7 + $0x18] sm:$0xff] }
  0xdc   :  { %2042 = vmatprep.subr.bf16.mxu0 %v2041_v28 }
  0xdf   :  { %2044 = vmatpush3.bf16.msra.mxu0 %v2041_v28 }
  0xe0   :  { %2046 = vmatprep.subr.bf16.mxu0 %v2045_v32 }
  0xe3   :  { %2048 = vmatpush3.bf16.msra.mxu0 %v2045_v32  ;;  %v791_v32 = vld [vmem:[%s2849_s7 + $0x20] sm:$0xff] }
  0xe4   :  { %2050 = vmatprep.subr.bf16.mxu0 %v2049_v35  ;;  %v2094_v34 = vpack.c.bf16 %v792_v33, %v791_v32 }
  0xe7   :  { %2052 = vmatpush3.bf16.msra.mxu0 %v2049_v35  ;;  %v793_v35 = vld [vmem:[%s2849_s7 + $0x30] sm:$0xff] }
  0xe8   :  { %2054 = vmatprep.subr.bf16.mxu0 %v2053_v38  ;;  %v2097_v37 = vpack.c.bf16 %v794_v36, %v793_v35 }
  0xeb   :  { %2056 = vmatpush3.bf16.msra.mxu0 %v2053_v38  ;;  %v795_v38 = vld [vmem:[%s2849_s7 + $0x40] sm:$0xff] }
  0xec   :  { %2058 = vmatprep.subr.bf16.mxu0 %v2057_v41  ;;  %v2100_v40 = vpack.c.bf16 %v796_v39, %v795_v38 }
  0xef   :  { %2060 = vmatpush3.bf16.msra.mxu0 %v2057_v41  ;;  %v797_v41 = vld [vmem:[%s2849_s7 + $0x50] sm:$0xff] }
  0xf0   :  { %v2103_v43 = vpack.c.bf16 %v798_v42, %v797_v41  ;;  %v1311_v41 = vld [vmem:[%s2851_s11] sm:$0xff]  ;;  %v1312_v42 = vld [vmem:[%s2851_s11 + $0x8] sm:$0xff] }
  0xf2   :  { %1911 = vmatmul.mubr.msk.f32.vlgmr.msra.gmra.mrb[4].mxu0 %vm138_vm1, %v1858_v26  ;;  %v789_v26 = vld [vmem:[%s2849_s7 + $0x10] sm:$0xff] }
  0xf3   :  { %478 = vmatprep.mubr.f32.mxu0 %v2218_v49  ;;  %v2091_v31 = vpack.c.bf16 %v790_v27, %v789_v26 }
 0x1ad   :  { %v2403_v50 = vpop.f32.mrb[2].mxu0 }
 0x1ae   :  { %v2405_v51 = vpop.f32.mrb[3].mxu0 }
 0x1c5   :  { %v1912_v52 = vpop.f32.mrb[4].mxu0 }
 0x1c6   :  { %v577_v53 = vsel %vm315_vm5, %v1912_v52, -inf  ;;  %v298_v54 = vpop.f32.mrb[5].mxu0 }
 0x1c7   :  { %v576_v55 = vsel %vm315_vm5, %v298_v54, -inf  ;;  %1690 = vmatmul.mubr.msk.f32.vlgmr.msra.gmra.mrb[0].mxu1 %vm315_vm5, %v298_v54  ;;  %v805_v54 = vld [vmem:[%s2849_s7 + $0x90] sm:$0xff] }
 0x1c8   :  { %v578_v56 = vmax.f32 %v576_v55, %v577_v53  ;;  %399 = vmatprep.mubr.f32.mxu1 %v2218_v49  ;;  %v806_v55 = vld [vmem:[%s2849_s7 + $0x98] sm:$0xff] }
 0x1ca   :  { %v579_v57 = vrot.slane %v578_v56, 4 }
 0x1cb   :  { %1691 = vmatmul.mubr.msk.f32.gmra.mrb[2].mxu1 %vm315_vm5, %v1912_v52  ;;  %v804_v52 = vld [vmem:[%s2849_s7 + $0x88] sm:$0xff] }
 0x1cc   :  { %v580_v58 = vmax.f32 %v578_v56, %v579_v57  ;;  %484 = vmatprep.mubr.f32.mxu1 %v2218_v49  ;;  %v2115_v56 = vpack.c.bf16 %v806_v55, %v805_v54  ;;  %v807_v57 = vld [vmem:[%s2849_s7 + $0xa0] sm:$0xff] }
 0x1ce   :  { %v581_v59 = vrot.slane %v580_v58, 2 }
 0x1d0   :  { %v582_v60 = vmax.f32 %v580_v58, %v581_v59  ;;  %v808_v58 = vld [vmem:[%s2849_s7 + $0xa8] sm:$0xff] }
 0x1d1   :  { %v2118_v59 = vpack.c.bf16 %v808_v58, %v807_v57  ;;  %v983_v58 = vld [vmem:[%s2852_s9 + $0x8] sm:$0xff] }
 0x1d2   :  { %v583_v61 = vrot.slane %v582_v60, 1 }
 0x1d4   :  { %v584_v62 = vmax.f32 %v582_v60, %v583_v61  ;;  %v809_v60 = vld [vmem:[%s2849_s7 + $0xb0] sm:$0xff]  ;;  %v810_v61 = vld [vmem:[%s2849_s7 + $0xb8] sm:$0xff] }
 0x1d6   :  { %v585_v63 = vadd.f32 %v584_v62, %v2405_v51  ;;  %v586_v0 = vadd.f32 %v2403_v50, %v584_v62  ;;  %v2121_v62 = vpack.c.bf16 %v810_v61, %v809_v60  ;;  %v987_v60 = vld [vmem:[%s2852_s9 + $0x28] sm:$0xff]  ;;  %v988_v61 = vld [vmem:[%s2852_s9 + $0x30] sm:$0xff] }
 0x1d8   :  { %v589_v17 = vmul.f32 0.2, %v585_v63  ;;  %vm587_vm7 = vcmp.gt.f32.partialorder %v585_v63, 0.0  ;;  %v590_v22 = vmul.f32 0.2, %v586_v0  ;;  %vm588_vm8 = vcmp.gt.f32.partialorder %v586_v0, 0.0 }
 0x1da   :  { %v591_v21 = vsel %vm587_vm7, %v585_v63, %v589_v17  ;;  %v592_v28 = vsel %vm588_vm8, %v586_v0, %v590_v22 }
 0x29a   :  { %v395_v1 = vpop.f32.mrb[0].mxu1 }
 0x29b   :  { %v397_v2 = vpop.f32.mrb[1].mxu1  ;;  %v406_v8 = vmul.f32 %v395_v1, %v311_v3 }
 0x29c   :  { %v407_v11 = vmul.f32 %v397_v2, %v312_v5 }
 0x29e   :  { %v401_v7 = vpop.f32.mrb[2].mxu1 }
 0x29f   :  { %v408_v9 = vmul.f32 %v401_v7, %v313_v4  ;;  %v403_v10 = vpop.f32.mrb[3].mxu1 }
 0x2a0   :  { %v409_v12 = vmul.f32 %v403_v10, %v314_v6 }
 0x2a1   :  { %v2069_v13 = vpack.c.bf16 %v408_v9, %v406_v8 }
 0x2a2   :  { %v2067_v14 = vpack.c.bf16 %v409_v12, %v407_v11 }
 0x2a4   :  { %2068 = vmatprep.subr.bf16.mxu0 %v2067_v14  ;;  %2193 = vmatprep.subr.bf16.mxu1 %v2067_v14 }
 0x2a5   :  { %2070 = vmatpush1.bf16.msra.mxu0 %v2069_v13  ;;  %2194 = vmatpush1.bf16.msra.mxu1 %v2069_v13 }
 0x2a6   :  { %2077 = vmatprep.subr.msk.bf16.mxu0 %vm2381_vm4, %v2385_v45  ;;  %2072 = vmatprep.subr.bf16.mxu1 %v2071_v15 }
 0x2a8   :  { %1692 = vmatmul.mubr.msk.f32.vlgmr.msra.gmra.mrb[6].mxu0 %vm410_vm6, %v2219_v18  ;;  %1693 = vmatmul.mubr.msk.f32.vlgmr.msra.gmra.mrb[4].mxu1 %vm410_vm6, %v2219_v18 }
 0x2a9   :  { %2080 = vmatpush1.bf16.msk.msra.mxu0 %vm2381_vm4, %v2393_v48  ;;  %663 = vmatprep.mubr.f32.mxu0 %v2218_v49 }
 0x2aa   :  { %2083 = vmatprep.subr.msk.bf16.mxu0 %vm2381_vm4, %v2385_v45  ;;  %2074 = vmatpush1.bf16.msra.mxu1 %v2073_v16 }
 0x2ab   :  { %563 = vmatprep.mubr.f32.mxu1 %v2218_v49  ;;  %2087 = vmatprep.subr.bf16.mxu1 %v2220_v24 }
 0x2ac   :  { %1698 = vmatmul.mubr.msk.f32.vlgmr.msra.gmra.mrb[8].mxu0 %vm315_vm5, %v591_v21 }
 0x2ad   :  { %2086 = vmatpush1.bf16.msk.msra.mxu0 %vm2381_vm4, %v2393_v48  ;;  %669 = vmatprep.mubr.f32.mxu0 %v2218_v49 }
 0x2ae   :  { %2125 = vmatprep.subr.msk.bf16.mxu0 %vm2381_vm4, %v2385_v45  ;;  %1694 = vmatmul.mubr.msk.f32.vlgmr.msra.gmra.mrb[6].mxu1 %vm410_vm6, %v491_v23  ;;  %v800_v45 = vld [vmem:[%s2849_s7 + $0x68] sm:$0xff] }
 0x2af   :  { %569 = vmatprep.mubr.f32.mxu1 %v2218_v49  ;;  %2089 = vmatpush1.bf16.msra.mxu1 %v2088_v25  ;;  %v2106_v46 = vpack.c.bf16 %v800_v45, %v799_v44  ;;  %v2133_v44 = vpack.c.bf16 %v1312_v42, %v1311_v41  ;;  %v1314_v45 = vld [vmem:[%s2851_s11 + $0x18] sm:$0xff] }
 0x2b0   :  { %1699 = vmatmul.mubr.msk.f32.gmra.mrb[10].mxu0 %vm315_vm5, %v592_v28  ;;  %2090 = vmatprep.subr.bf16.mxu1 %v2220_v24  ;;  %v1266_v42 = vld [vmem:[%s2853_s10 + $0x18] sm:$0xff] }
 0x2b1   :  { %746 = vmatprep.mubr.f32.mxu0 %v2218_v49 }
 0x2b2   :  { %1695 = vmatmul.mubr.msk.f32.gmra.mrb[8].mxu1 %vm410_vm6, %v492_v30 }
 0x2b3   :  { %2092 = vmatpush1.bf16.msra.mxu1 %v2091_v31 }
 0x2b4   :  { %1702 = vmatmul.mubr.msk.f32.vlgmr.msra.gmra.mrb[6].mxu0 %vm315_vm5, %v2405_v51  ;;  %2093 = vmatprep.subr.bf16.mxu1 %v2220_v24  ;;  %v803_v51 = vld [vmem:[%s2849_s7 + $0x80] sm:$0xff] }
 0x2b5   :  { %2128 = vmatpush1.bf16.msk.msra.mxu0 %vm2381_vm4, %v2393_v48  ;;  %752 = vmatprep.mubr.f32.mxu0 %v2218_v49  ;;  %v802_v48 = vld [vmem:[%s2849_s7 + $0x78] sm:$0xff]  ;;  %v2112_v53 = vpack.c.bf16 %v804_v52, %v803_v51 }
 0x2b6   :  { %2130 = vmatprep.subr.bf16.mxu0 %v2345_v29 }
 0x2b7   :  { %2095 = vmatpush1.bf16.msra.mxu1 %v2094_v34 }
 0x2b8   :  { %1703 = vmatmul.mubr.msk.f32.gmra.mrb[12].mxu0 %vm315_vm5, %v2403_v50  ;;  %2096 = vmatprep.subr.bf16.mxu1 %v2220_v24  ;;  %v2109_v50 = vpack.c.bf16 %v802_v48, %v801_v47  ;;  %v1315_v47 = vld [vmem:[%s2851_s11 + $0x20] sm:$0xff]  ;;  %v1316_v48 = vld [vmem:[%s2851_s11 + $0x28] sm:$0xff] }
 0x2b9   :  { %965 = vmatprep.mubr.f32.mxu0 %v2218_v49 }
 0x2bb   :  { %2098 = vmatpush1.bf16.msra.mxu1 %v2097_v37 }
 0x2bc   :  { %2099 = vmatprep.subr.bf16.mxu1 %v2220_v24 }
 0x2bf   :  { %2101 = vmatpush1.bf16.msra.mxu1 %v2100_v40 }
 0x2c0   :  { %2102 = vmatprep.subr.bf16.mxu1 %v2220_v24 }
 0x2c3   :  { %2104 = vmatpush1.bf16.msra.mxu1 %v2103_v43  ;;  %v1313_v43 = vld [vmem:[%s2851_s11 + $0x10] sm:$0xff] }
 0x2c4   :  { %2105 = vmatprep.subr.bf16.mxu1 %v2220_v24 }
 0x2c7   :  { %2107 = vmatpush1.bf16.msra.mxu1 %v2106_v46  ;;  %v2137_v46 = vpack.c.bf16 %v1314_v45, %v1313_v43 }
 0x2c8   :  { %2108 = vmatprep.subr.bf16.mxu1 %v2220_v24 }
 0x2cb   :  { %2110 = vmatpush1.bf16.msra.mxu1 %v2109_v50  ;;  %v2141_v50 = vpack.c.bf16 %v1316_v48, %v1315_v47  ;;  %v1268_v48 = vld [vmem:[%s2853_s10 + $0x28] sm:$0xff] }
 0x2cc   :  { %2111 = vmatprep.subr.bf16.mxu1 %v2220_v24 }
 0x2cf   :  { %2113 = vmatpush1.bf16.msra.mxu1 %v2112_v53 }
 0x2d0   :  { %2114 = vmatprep.subr.bf16.mxu1 %v2220_v24 }
 0x2d3   :  { %2116 = vmatpush1.bf16.msra.mxu1 %v2115_v56  ;;  %v982_v56 = vld [vmem:[%s2852_s9] sm:$0xff] }
 0x2d4   :  { %2117 = vmatprep.subr.bf16.mxu1 %v2220_v24 }
 0x2d7   :  { %2119 = vmatpush1.bf16.msra.mxu1 %v2118_v59  ;;  %v986_v59 = vld [vmem:[%s2852_s9 + $0x20] sm:$0xff] }
 0x2d8   :  { %2120 = vmatprep.subr.bf16.mxu1 %v2220_v24 }
 0x2db   :  { %2122 = vmatpush1.bf16.msra.mxu1 %v2121_v62  ;;  %v989_v62 = vld [vmem:[%s2852_s9 + $0x38] sm:$0xff] }
 0x2dc   :  { %2134 = vmatprep.subr.bf16.mxu1 %v2133_v44 }
 0x37b   :  { %v486_v63 = vpop.f32.mrb[4].mxu1 }
 0x37c   :  { %v488_v0 = vpop.f32.mrb[5].mxu1 }
 0x37f   :  { %v665_v1 = vpop.f32.mrb[8].mxu0 }
 0x380   :  { %v667_v2 = vpop.f32.mrb[9].mxu0 }
 0x381   :  { %v565_v3 = vpop.f32.mrb[6].mxu1 }
 0x382   :  { %v567_v4 = vpop.f32.mrb[7].mxu1 }
 0x383   :  { %v671_v5 = vpop.f32.mrb[10].mxu0 }
 0x384   :  { %v673_v6 = vpop.f32.mrb[11].mxu0 }
 0x385   :  { %v571_v7 = vpop.f32.mrb[8].mxu1 }
 0x386   :  { %v573_v8 = vpop.f32.mrb[9].mxu1 }
 0x387   :  { %v748_v9 = vpop.f32.mrb[6].mxu0 }
 0x388   :  { %vm759_vm9 = vcmp.gt.f32.partialorder %v748_v9, 0.0  ;;  %v763_v10 = vmul.f32 0.2, %v748_v9  ;;  %v750_v11 = vpop.f32.mrb[7].mxu0 }
 0x389   :  { %vm760_vm10 = vcmp.gt.f32.partialorder %v750_v11, 0.0  ;;  %v764_v12 = vmul.f32 0.2, %v750_v11 }
 0x38a   :  { %v767_v13 = vsel %vm759_vm9, %v748_v9, %v763_v10  ;;  %v1000_v9 = vld [vmem:[%s2852_s9 + $0x90] sm:$0xff]  ;;  %v1001_v10 = vld [vmem:[%s2852_s9 + $0x98] sm:$0xff] }
 0x38b   :  { %v754_v14 = vpop.f32.mrb[12].mxu0  ;;  %v771_v15 = vsub.f32 %v767_v13, %v665_v1  ;;  %v768_v16 = vsel %vm760_vm10, %v750_v11, %v764_v12  ;;  %v992_v1 = vld [vmem:[%s2852_s9 + $0x50] sm:$0xff]  ;;  %v1002_v11 = vld [vmem:[%s2852_s9 + $0xa0] sm:$0xff]  ;;  %v1003_v12 = vld [vmem:[%s2852_s9 + $0xa8] sm:$0xff] }
 0x38c   :  { %v755_v17 = vadd.f32 %v754_v14, %v486_v63  ;;  %v756_v18 = vpop.f32.mrb[13].mxu0  ;;  %v772_v19 = vsub.f32 %v768_v16, %v667_v2  ;;  %v990_v63 = vld [vmem:[%s2852_s9 + $0x40] sm:$0xff]  ;;  %v993_v2 = vld [vmem:[%s2852_s9 + $0x58] sm:$0xff]  ;;  %v1004_v13 = vld [vmem:[%s2852_s9 + $0xb0] sm:$0xff] }
 0x38d   :  { %v775_v20 = vadd.f32 %v771_v15, %v565_v3  ;;  %v757_v21 = vadd.f32 %v756_v18, %v488_v0  ;;  %v991_v0 = vld [vmem:[%s2852_s9 + $0x48] sm:$0xff]  ;;  %v994_v3 = vld [vmem:[%s2852_s9 + $0x60] sm:$0xff]  ;;  %v1005_v14 = vld [vmem:[%s2852_s9 + $0xb8] sm:$0xff] }
 0x38e   :  { %vm761_vm11 = vcmp.gt.f32.partialorder %v755_v17, 0.0  ;;  %v765_v22 = vmul.f32 0.2, %v755_v17  ;;  %v776_v23 = vadd.f32 %v772_v19, %v567_v4  ;;  %v995_v4 = vld [vmem:[%s2852_s9 + $0x68] sm:$0xff]  ;;  %v1317_v15 = vld [vmem:[%s2851_s11 + $0x30] sm:$0xff]  ;;  %v1318_v16 = vld [vmem:[%s2851_s11 + $0x38] sm:$0xff] }
 0x38f   :  { %v779_v25 = vmul.f32 1.442695, %v775_v20  ;;  %vm762_vm12 = vcmp.gt.f32.partialorder %v757_v21, 0.0  ;;  %v766_v26 = vmul.f32 0.2, %v757_v21  ;;  %v1319_v18 = vld [vmem:[%s2851_s11 + $0x40] sm:$0xff] }
 0x390   :  { %v781_v27 = vmul.f32 1.442695, %v776_v23  ;;  %v769_v28 = vsel %vm761_vm11, %v755_v17, %v765_v22  ;;  %v2145_v17 = vpack.c.bf16 %v1318_v16, %v1317_v15  ;;  %v1320_v19 = vld [vmem:[%s2851_s11 + $0x48] sm:$0xff]  ;;  %v1322_v22 = vld [vmem:[%s2851_s11 + $0x58] sm:$0xff] }
 0x391   :  { %v773_v30 = vsub.f32 %v769_v28, %v671_v5  ;;  %v770_v31 = vsel %vm762_vm12, %v757_v21, %v766_v26  ;;  %v996_v5 = vld [vmem:[%s2852_s9 + $0x70] sm:$0xff]  ;;  %v2149_v20 = vpack.c.bf16 %v1320_v19, %v1319_v18  ;;  %v1280_v19 = vld [vmem:[%s2853_s10 + $0x88] sm:$0xff] }
 0x392   :  { %2203 = vpow2.f32 %v781_v27  ;;  %v774_v32 = vsub.f32 %v770_v31, %v673_v6  ;;  %v997_v6 = vld [vmem:[%s2852_s9 + $0x78] sm:$0xff]  ;;  %v1321_v21 = vld [vmem:[%s2851_s11 + $0x50] sm:$0xff]  ;;  %v1263_v31 = vld [vmem:[%s2853_s10] sm:$0xff] }
 0x393   :  { %2205 = vpow2.f32 %v779_v25  ;;  %v777_v33 = vadd.f32 %v773_v30, %v571_v7  ;;  %v998_v7 = vld [vmem:[%s2852_s9 + $0x80] sm:$0xff]  ;;  %v2153_v23 = vpack.c.bf16 %v1322_v22, %v1321_v21 }
 0x394   :  { %v778_v34 = vadd.f32 %v774_v32, %v573_v8  ;;  %v999_v8 = vld [vmem:[%s2852_s9 + $0x88] sm:$0xff] }
 0x395   :  { %v783_v35 = vmul.f32 1.442695, %v777_v33  ;;  %v1264_v33 = vld [vmem:[%s2853_s10 + $0x8] sm:$0xff] }
 0x396   :  { %v785_v36 = vmul.f32 1.442695, %v778_v34 }
 0x398   :  { %2207 = vpow2.f32 %v785_v36 }
 0x399   :  { %2209 = vpow2.f32 %v783_v35 }
 0x39c   :  { %v2553_v37 = vpop.eup %2203 }
 0x39d   :  { %v2555_v38 = vpop.eup %2205  ;;  %1704 = vmatprep.mubr.msk.f32.mxu1 %vm811_vm13, %v2553_v37 }
 0x39e   :  { %883 = vmatmul.mubr.f32.vlgmr.msra.gmra.mrb[10].mxu1 %v2555_v38 }
 0x39f   :  { %2136 = vmatpush3.bf16.msra.mxu1 %v2133_v44 }
 0x3a0   :  { %2138 = vmatprep.subr.bf16.mxu1 %v2137_v46 }
 0x3a2   :  { %v2560_v39 = vpop.eup %2207 }
 0x3a3   :  { %v2562_v40 = vpop.eup %2209  ;;  %1705 = vmatprep.mubr.msk.f32.mxu1 %vm811_vm13, %v2560_v39  ;;  %2140 = vmatpush3.bf16.msra.mxu1 %v2137_v46  ;;  %v1267_v46 = vld [vmem:[%s2853_s10 + $0x20] sm:$0xff] }
 0x3a4   :  { %888 = vmatmul.mubr.f32.gmra.mrb[12].mxu1 %v2562_v40  ;;  %2142 = vmatprep.subr.bf16.mxu1 %v2141_v50 }
 0x3a7   :  { %2144 = vmatpush3.bf16.msra.mxu1 %v2141_v50 }
 0x3a8   :  { %2146 = vmatprep.subr.bf16.mxu1 %v2145_v17 }
 0x3ab   :  { %2148 = vmatpush3.bf16.msra.mxu1 %v2145_v17  ;;  %v1279_v17 = vld [vmem:[%s2853_s10 + $0x80] sm:$0xff] }
 0x3ac   :  { %2150 = vmatprep.subr.bf16.mxu1 %v2149_v20 }
 0x3af   :  { %2152 = vmatpush3.bf16.msra.mxu1 %v2149_v20 }
 0x3b0   :  { %2154 = vmatprep.subr.bf16.mxu1 %v2153_v23 }
 0x3b3   :  { %2156 = vmatpush3.bf16.msra.mxu1 %v2153_v23  ;;  %v1281_v23 = vld [vmem:[%s2853_s10 + $0x90] sm:$0xff] }
 0x471   :  { %v884_v51 = vpop.f32.mrb[10].mxu1 }
 0x472   :  { %2211 = vrcp.f32 %v884_v51  ;;  %v886_v52 = vpop.f32.mrb[11].mxu1 }
 0x477   :  { %v889_v53 = vpop.f32.mrb[12].mxu1 }
 0x478   :  { %2213 = vrcp.f32 %v889_v53  ;;  %v891_v54 = vpop.f32.mrb[13].mxu1  ;;  %v1269_v53 = vld [vmem:[%s2853_s10 + $0x30] sm:$0xff] }
 0x47c   :  { %v2212_v55 = vpop.eup %2211 }
 0x47d   :  { %1708 = vmatmul.mubr.msk.f32.vlgmr.msra.gmra.mrb[14].mxu0 %vm315_vm5, %v2212_v55  ;;  %v1270_v55 = vld [vmem:[%s2853_s10 + $0x38] sm:$0xff] }
 0x47e   :  { %2132 = vmatpush3.bf16.msra.mxu0 %v2345_v29  ;;  %971 = vmatprep.mubr.f32.mxu0 %v2218_v49  ;;  %v984_v29 = vld [vmem:[%s2852_s9 + $0x10] sm:$0xff]  ;;  %v985_v49 = vld [vmem:[%s2852_s9 + $0x18] sm:$0xff] }
 0x47f   :  { %2157 = vmatprep.subr.bf16.mxu0 %v2220_v24 }
 0x482   :  { %v2214_v57 = vpop.eup %2213 }
 0x483   :  { %1709 = vmatmul.mubr.msk.f32.gmra.mrb[16].mxu0 %vm315_vm5, %v2214_v57 }
 0x484   :  { %1917 = vmatprep.mubr.msk.f32.mxu0 %vm410_vm6, %v982_v56 }
 0x487   :  { %1918 = vmatmul.mubr.msk.f32.vlgmr.msra.gmra.mrb[18].mxu0 %vm410_vm6, %v983_v58 }
 0x488   :  { %1920 = vmatprep.mubr.msk.f32.mxu0 %vm410_vm6, %v984_v29  ;;  %v1271_v29 = vld [vmem:[%s2853_s10 + $0x40] sm:$0xff] }
 0x48b   :  { %1921 = vmatmul.mubr.msk.f32.gmra.mrb[20].mxu0 %vm410_vm6, %v985_v49 }
 0x48c   :  { %1923 = vmatprep.mubr.msk.f32.mxu0 %vm410_vm6, %v986_v59  ;;  %v1272_v59 = vld [vmem:[%s2853_s10 + $0x48] sm:$0xff] }
 0x48f   :  { %1924 = vmatmul.mubr.msk.f32.gmra.mrb[22].mxu0 %vm410_vm6, %v987_v60 }
 0x490   :  { %1926 = vmatprep.mubr.msk.f32.mxu0 %vm410_vm6, %v988_v61 }
 0x493   :  { %1927 = vmatmul.mubr.msk.f32.gmra.mrb[24].mxu0 %vm410_vm6, %v989_v62 }
 0x494   :  { %1929 = vmatprep.mubr.msk.f32.mxu0 %vm410_vm6, %v990_v63  ;;  %v1273_v63 = vld [vmem:[%s2853_s10 + $0x50] sm:$0xff] }
 0x497   :  { %1930 = vmatmul.mubr.msk.f32.gmra.mrb[26].mxu0 %vm410_vm6, %v991_v0 }
 0x498   :  { %1932 = vmatprep.mubr.msk.f32.mxu0 %vm410_vm6, %v992_v1  ;;  %v1274_v1 = vld [vmem:[%s2853_s10 + $0x58] sm:$0xff] }
 0x49b   :  { %1933 = vmatmul.mubr.msk.f32.gmra.mrb[28].mxu0 %vm410_vm6, %v993_v2 }
 0x49c   :  { %1935 = vmatprep.mubr.msk.f32.mxu0 %vm410_vm6, %v994_v3 }
 0x49f   :  { %1936 = vmatmul.mubr.msk.f32.gmra.mrb[30].mxu0 %vm410_vm6, %v995_v4 }
 0x4a0   :  { %1938 = vmatprep.mubr.msk.f32.mxu0 %vm410_vm6, %v996_v5  ;;  %v1275_v5 = vld [vmem:[%s2853_s10 + $0x60] sm:$0xff] }
 0x4a3   :  { %1939 = vmatmul.mubr.msk.f32.gmra.mrb[32].mxu0 %vm410_vm6, %v997_v6 }
 0x4a4   :  { %1941 = vmatprep.mubr.msk.f32.mxu0 %vm410_vm6, %v998_v7  ;;  %v1276_v7 = vld [vmem:[%s2853_s10 + $0x68] sm:$0xff] }
 0x4a7   :  { %1942 = vmatmul.mubr.msk.f32.gmra.mrb[34].mxu0 %vm410_vm6, %v999_v8 }
 0x4a8   :  { %1944 = vmatprep.mubr.msk.f32.mxu0 %vm410_vm6, %v1000_v9 }
 0x4ab   :  { %1945 = vmatmul.mubr.msk.f32.gmra.mrb[36].mxu0 %vm410_vm6, %v1001_v10 }
 0x4ac   :  { %1947 = vmatprep.mubr.msk.f32.mxu0 %vm410_vm6, %v1002_v11  ;;  %v1277_v11 = vld [vmem:[%s2853_s10 + $0x70] sm:$0xff] }
 0x4af   :  { %1948 = vmatmul.mubr.msk.f32.gmra.mrb[38].mxu0 %vm410_vm6, %v1003_v12 }
 0x4b0   :  { %1950 = vmatprep.mubr.msk.f32.mxu0 %vm410_vm6, %v1004_v13  ;;  %v1278_v13 = vld [vmem:[%s2853_s10 + $0x78] sm:$0xff] }
 0x4b3   :  { %1951 = vmatmul.mubr.msk.f32.gmra.mrb[40].mxu0 %vm410_vm6, %v1005_v14 }
 0x550   :  { %v2704_v25 = vpop.f32.mrb[14].mxu0 }
 0x551   :  { %v969_v26 = vpop.f32.mrb[15].mxu0 }
 0x552   :  { %v979_v27 = vmul.f32 %v2553_v37, %v969_v26  ;;  %v1265_v37 = vld [vmem:[%s2853_s10 + $0x10] sm:$0xff] }
 0x554   :  { %1758 = vmatprep.mubr.msk.f32.mxu0 %vm811_vm13, %v979_v27  ;;  %v1282_v27 = vld [vmem:[%s2853_s10 + $0x98] sm:$0xff] }
 0x556   :  { %v2708_v28 = vpop.f32.mrb[16].mxu0 }
 0x557   :  { %v2710_v30 = vpop.f32.mrb[17].mxu0 }
 0x55a   :  { %v1919_v32 = vpop.f32.mrb[18].mxu0 }
 0x55b   :  { %v1144_v34 = vpop.f32.mrb[19].mxu0  ;;  %v1288_v36 = vmul.f32 %v1919_v32, %v1264_v33 }
 0x55c   :  { %v1287_v35 = vmul.f32 %v1263_v31, %v1144_v34  ;;  %v1283_v34 = vld [vmem:[%s2853_s10 + $0xa0] sm:$0xff] }
 0x55e   :  { %v1922_v41 = vpop.f32.mrb[20].mxu0  ;;  %1977 = vmatprep.mubr.msk.f32.mxu1 %vm138_vm1, %v1287_v35 }
 0x55f   :  { %v1154_v43 = vpop.f32.mrb[21].mxu0  ;;  %1978 = vmatmul.mubr.msk.f32.vlgmr.msra.gmra.mrb[14].mxu1 %vm138_vm1, %v1288_v36  ;;  %v1290_v45 = vmul.f32 %v1922_v41, %v1266_v42  ;;  %v1284_v36 = vld [vmem:[%s2853_s10 + $0xa8] sm:$0xff] }
 0x560   :  { %v1289_v44 = vmul.f32 %v1265_v37, %v1154_v43  ;;  %v1285_v43 = vld [vmem:[%s2853_s10 + $0xb0] sm:$0xff] }
 0x562   :  { %v1925_v47 = vpop.f32.mrb[22].mxu0  ;;  %1980 = vmatprep.mubr.msk.f32.mxu1 %vm138_vm1, %v1289_v44 }
 0x563   :  { %v1164_v50 = vpop.f32.mrb[23].mxu0  ;;  %1981 = vmatmul.mubr.msk.f32.gmra.mrb[16].mxu1 %vm138_vm1, %v1290_v45  ;;  %v1292_v52 = vmul.f32 %v1925_v47, %v1268_v48  ;;  %v1286_v45 = vld [vmem:[%s2853_s10 + $0xb8] sm:$0xff] }
 0x564   :  { %v1291_v51 = vmul.f32 %v1267_v46, %v1164_v50 }
 0x566   :  { %v1928_v54 = vpop.f32.mrb[24].mxu0  ;;  %1983 = vmatprep.mubr.msk.f32.mxu1 %vm138_vm1, %v1291_v51 }
 0x567   :  { %v1174_v56 = vpop.f32.mrb[25].mxu0  ;;  %1984 = vmatmul.mubr.msk.f32.gmra.mrb[18].mxu1 %vm138_vm1, %v1292_v52  ;;  %v1294_v58 = vmul.f32 %v1928_v54, %v1270_v55 }
 0x568   :  { %v1293_v57 = vmul.f32 %v1269_v53, %v1174_v56 }
 0x56a   :  { %v1931_v49 = vpop.f32.mrb[26].mxu0  ;;  %1986 = vmatprep.mubr.msk.f32.mxu1 %vm138_vm1, %v1293_v57 }
 0x56b   :  { %v1184_v60 = vpop.f32.mrb[27].mxu0  ;;  %1987 = vmatmul.mubr.msk.f32.gmra.mrb[20].mxu1 %vm138_vm1, %v1294_v58  ;;  %v1296_v62 = vmul.f32 %v1931_v49, %v1272_v59 }
 0x56c   :  { %v1295_v61 = vmul.f32 %v1271_v29, %v1184_v60 }
 0x56e   :  { %v1934_v0 = vpop.f32.mrb[28].mxu0  ;;  %1989 = vmatprep.mubr.msk.f32.mxu1 %vm138_vm1, %v1295_v61 }
 0x56f   :  { %v1194_v2 = vpop.f32.mrb[29].mxu0  ;;  %1990 = vmatmul.mubr.msk.f32.gmra.mrb[22].mxu1 %vm138_vm1, %v1296_v62  ;;  %v1298_v4 = vmul.f32 %v1934_v0, %v1274_v1 }
 0x570   :  { %v1297_v3 = vmul.f32 %v1273_v63, %v1194_v2 }
 0x572   :  { %v1937_v6 = vpop.f32.mrb[30].mxu0  ;;  %1992 = vmatprep.mubr.msk.f32.mxu1 %vm138_vm1, %v1297_v3 }
 0x573   :  { %v1204_v8 = vpop.f32.mrb[31].mxu0  ;;  %1993 = vmatmul.mubr.msk.f32.gmra.mrb[24].mxu1 %vm138_vm1, %v1298_v4  ;;  %v1300_v10 = vmul.f32 %v1937_v6, %v1276_v7 }
 0x574   :  { %v1299_v9 = vmul.f32 %v1275_v5, %v1204_v8 }
 0x576   :  { %v1940_v12 = vpop.f32.mrb[32].mxu0  ;;  %1995 = vmatprep.mubr.msk.f32.mxu1 %vm138_vm1, %v1299_v9 }
 0x577   :  { %v1214_v14 = vpop.f32.mrb[33].mxu0  ;;  %1996 = vmatmul.mubr.msk.f32.gmra.mrb[26].mxu1 %vm138_vm1, %v1300_v10  ;;  %v1302_v16 = vmul.f32 %v1940_v12, %v1278_v13 }
 0x578   :  { %v1301_v15 = vmul.f32 %v1277_v11, %v1214_v14 }
 0x57a   :  { %v1943_v18 = vpop.f32.mrb[34].mxu0  ;;  %1998 = vmatprep.mubr.msk.f32.mxu1 %vm138_vm1, %v1301_v15 }
 0x57b   :  { %v1224_v20 = vpop.f32.mrb[35].mxu0  ;;  %1999 = vmatmul.mubr.msk.f32.gmra.mrb[28].mxu1 %vm138_vm1, %v1302_v16  ;;  %v1304_v22 = vmul.f32 %v1943_v18, %v1280_v19 }
 0x57c   :  { %v1303_v21 = vmul.f32 %v1279_v17, %v1224_v20  ;;  %v978_v20 = vmul.f32 %v2555_v38, %v2704_v25  ;;  %v2215_v38 = vld [vmem:[%s2844_s0] sm:$0xff] }
 0x57e   :  { %v1946_v26 = vpop.f32.mrb[36].mxu0  ;;  %2001 = vmatprep.mubr.msk.f32.mxu1 %vm138_vm1, %v1303_v21  ;;  %v981_v21 = vmul.f32 %v2560_v39, %v2710_v30 }
 0x57f   :  { %v1234_v31 = vpop.f32.mrb[37].mxu0  ;;  %2002 = vmatmul.mubr.msk.f32.gmra.mrb[30].mxu1 %vm138_vm1, %v1304_v22  ;;  %v1306_v33 = vmul.f32 %v1946_v26, %v1282_v27  ;;  %v980_v22 = vmul.f32 %v2562_v40, %v2708_v28  ;;  %v2216_v40 = vld [vmem:[%s2844_s0 + $0x8] sm:$0xff] }
 0x580   :  { %v1305_v32 = vmul.f32 %v1281_v23, %v1234_v31 }
 0x582   :  { %v1949_v35 = vpop.f32.mrb[38].mxu0  ;;  %2004 = vmatprep.mubr.msk.f32.mxu1 %vm138_vm1, %v1305_v32 }
 0x583   :  { %v1244_v37 = vpop.f32.mrb[39].mxu0  ;;  %2005 = vmatmul.mubr.msk.f32.gmra.mrb[32].mxu1 %vm138_vm1, %v1306_v33  ;;  %v1308_v42 = vmul.f32 %v1949_v35, %v1284_v36 }
 0x584   :  { %v1307_v41 = vmul.f32 %v1283_v34, %v1244_v37 }
 0x586   :  { %v1952_v44 = vpop.f32.mrb[40].mxu0  ;;  %2007 = vmatprep.mubr.msk.f32.mxu1 %vm138_vm1, %v1307_v41 }
 0x587   :  { %v1254_v46 = vpop.f32.mrb[41].mxu0  ;;  %2008 = vmatmul.mubr.msk.f32.gmra.mrb[34].mxu1 %vm138_vm1, %v1308_v42  ;;  %v1310_v48 = vmul.f32 %v1952_v44, %v1286_v45 }
 0x588   :  { %v1309_v47 = vmul.f32 %v1285_v43, %v1254_v46 }
 0x58a   :  { %2010 = vmatprep.mubr.msk.f32.mxu1 %vm138_vm1, %v1309_v47 }
 0x58b   :  { %2011 = vmatmul.mubr.msk.f32.gmra.mrb[36].mxu1 %vm138_vm1, %v1310_v48 }
 0x632   :  { %v1979_v50 = vpop.f32.mrb[14].mxu1 }
 0x633   :  { %v1461_v51 = vpop.f32.mrb[15].mxu1 }
 0x634   :  { %v2158_v52 = vpack.c.bf16 %v1979_v50, %v1461_v51 }
 0x636   :  { %v1982_v53 = vpop.f32.mrb[16].mxu1  ;;  %2159 = vmatpush1.bf16.msra.mxu0 %v2158_v52 }
 0x637   :  { %v1471_v54 = vpop.f32.mrb[17].mxu1  ;;  %2160 = vmatprep.subr.bf16.mxu0 %v2220_v24 }
 0x638   :  { %v2161_v55 = vpack.c.bf16 %v1982_v53, %v1471_v54 }
 0x63a   :  { %v1985_v56 = vpop.f32.mrb[18].mxu1  ;;  %2162 = vmatpush1.bf16.msra.mxu0 %v2161_v55 }
 0x63b   :  { %v1481_v57 = vpop.f32.mrb[19].mxu1  ;;  %2163 = vmatprep.subr.bf16.mxu0 %v2220_v24 }
 0x63c   :  { %v2164_v58 = vpack.c.bf16 %v1985_v56, %v1481_v57 }
 0x63e   :  { %v1988_v29 = vpop.f32.mrb[20].mxu1  ;;  %2165 = vmatpush1.bf16.msra.mxu0 %v2164_v58 }
 0x63f   :  { %v1491_v49 = vpop.f32.mrb[21].mxu1  ;;  %2166 = vmatprep.subr.bf16.mxu0 %v2220_v24 }
 0x640   :  { %v2167_v59 = vpack.c.bf16 %v1988_v29, %v1491_v49 }
 0x642   :  { %v1991_v60 = vpop.f32.mrb[22].mxu1  ;;  %2168 = vmatpush1.bf16.msra.mxu0 %v2167_v59 }
 0x643   :  { %v1501_v61 = vpop.f32.mrb[23].mxu1  ;;  %2169 = vmatprep.subr.bf16.mxu0 %v2220_v24 }
 0x644   :  { %v2170_v62 = vpack.c.bf16 %v1991_v60, %v1501_v61 }
 0x646   :  { %v1994_v63 = vpop.f32.mrb[24].mxu1  ;;  %2171 = vmatpush1.bf16.msra.mxu0 %v2170_v62 }
 0x647   :  { %v1511_v0 = vpop.f32.mrb[25].mxu1  ;;  %2172 = vmatprep.subr.bf16.mxu0 %v2220_v24 }
 0x648   :  { %v2173_v1 = vpack.c.bf16 %v1994_v63, %v1511_v0 }
 0x64a   :  { %v1997_v2 = vpop.f32.mrb[26].mxu1  ;;  %2174 = vmatpush1.bf16.msra.mxu0 %v2173_v1 }
 0x64b   :  { %v1521_v3 = vpop.f32.mrb[27].mxu1  ;;  %2175 = vmatprep.subr.bf16.mxu0 %v2220_v24 }
 0x64c   :  { %v2176_v4 = vpack.c.bf16 %v1997_v2, %v1521_v3 }
 0x64e   :  { %v2000_v5 = vpop.f32.mrb[28].mxu1  ;;  %2177 = vmatpush1.bf16.msra.mxu0 %v2176_v4 }
 0x64f   :  { %v1531_v6 = vpop.f32.mrb[29].mxu1  ;;  %2178 = vmatprep.subr.bf16.mxu0 %v2220_v24 }
 0x650   :  { %v2179_v7 = vpack.c.bf16 %v2000_v5, %v1531_v6 }
 0x652   :  { %v2003_v8 = vpop.f32.mrb[30].mxu1  ;;  %2180 = vmatpush1.bf16.msra.mxu0 %v2179_v7 }
 0x653   :  { %v1541_v9 = vpop.f32.mrb[31].mxu1  ;;  %2181 = vmatprep.subr.bf16.mxu0 %v2220_v24 }
 0x654   :  { %v2182_v10 = vpack.c.bf16 %v2003_v8, %v1541_v9 }
 0x656   :  { %v2006_v11 = vpop.f32.mrb[32].mxu1  ;;  %2183 = vmatpush1.bf16.msra.mxu0 %v2182_v10 }
 0x657   :  { %v1551_v12 = vpop.f32.mrb[33].mxu1  ;;  %2184 = vmatprep.subr.bf16.mxu0 %v2220_v24 }
 0x658   :  { %v2185_v13 = vpack.c.bf16 %v2006_v11, %v1551_v12 }
 0x65a   :  { %v2009_v14 = vpop.f32.mrb[34].mxu1  ;;  %2186 = vmatpush1.bf16.msra.mxu0 %v2185_v13 }
 0x65b   :  { %v1561_v15 = vpop.f32.mrb[35].mxu1  ;;  %2187 = vmatprep.subr.bf16.mxu0 %v2220_v24 }
 0x65c   :  { %v2188_v16 = vpack.c.bf16 %v2009_v14, %v1561_v15 }
 0x65e   :  { %v2012_v17 = vpop.f32.mrb[36].mxu1  ;;  %2189 = vmatpush1.bf16.msra.mxu0 %v2188_v16 }
 0x65f   :  { %v1571_v18 = vpop.f32.mrb[37].mxu1  ;;  %2190 = vmatprep.subr.bf16.mxu0 %v2220_v24  ;;  %v1760_v24 = vld [vmem:[%s2854_s5] ss:$0 sm:$0xff] }
 0x660   :  { %v2191_v19 = vpack.c.bf16 %v2012_v17, %v1571_v18 }
 0x662   :  { %2192 = vmatpush1.bf16.msra.mxu0 %v2191_v19 }
 0x665   :  { %1651 = vmatmul.mubr.f32.vlgmr.msra.gmra.mrb[42].mxu0 %v978_v20 }
 0x666   :  { %1759 = vmatprep.mubr.msk.f32.mxu0 %vm811_vm13, %v981_v21 }
 0x669   :  { %1656 = vmatmul.mubr.f32.gmra.mrb[44].mxu0 %v980_v22 }
 0x738   :  { %v1652_v23 = vpop.f32.mrb[42].mxu0 }
 0x739   :  { %v1661_v26 = vmul.f32 0.083333336, %v1652_v23  ;;  %v1654_v27 = vpop.f32.mrb[43].mxu0 }
 0x73b   :  { %v1670_v31 = vadd.f32 %v1760_v24, %v1661_v26 }
 0x73c   :  { %v1657_v32 = vpop.f32.mrb[44].mxu0 }
 0x73d   :  { %v1672_v39 = vadd.f32 %v2215_v38, %v1670_v31  ;;  %v1662_v25 = vmul.f32 0.083333336, %v1657_v32  ;;  %v1659_v30 = vpop.f32.mrb[45].mxu0 }
 0x73f   :  { %v1674_v33 = vmax.f32 %v1672_v39, 0.0  ;;  %v1671_v34 = vadd.f32 %v1760_v24, %v1662_v25 }
 0x741   :  { %1676 = vst.msk [vmem:[%s2855_s12] sm:$0xff] %vm44_vm0, %v1674_v33  ;;  %v1673_v28 = vadd.f32 %v2216_v40, %v1671_v34 }
 0x743   :  { %v1675_v35 = vmax.f32 %v1673_v28, 0.0 }
 0x745   :  { %1677 = vst.msk [vmem:[%s2855_s12 + $0x8] sm:$0xff] %vm44_vm0, %v1675_v35 }

</bundles_post_ra>
